<compile_context>
chip_gen: v7x
topology: tpu7x:2x2x1
jax: 0.10.0
libtpu: 0.0.40
codegen_flags: <defaults>
</compile_context>

<pallas_src>
import math

import jax
import jax.numpy as jnp
from jax import lax
from jax.experimental import pallas as pl
from jax.experimental.pallas import tpu as pltpu

_LANE = 128
_SUBLANE_BF16 = 16   # bf16 vregs pack [16, 128]; pad batch to 16


def _round_up(x, m):
    return ((x + m - 1) // m) * m


def _rnn_layer_kernel(x_ref, wih_ref, bias_ref, whh_ref, h0_ref, y_ref,
                      h_scratch, xw_scratch):
    """One RNN layer, one time chunk.

    x_ref:      (tc*Bp, Dp) bf16  layer input chunk, flattened (time, batch)
    wih_ref:    (Dp, Hp)    bf16  W_ih^T (resident, constant index map)
    bias_ref:   (1, Hp)     f32   b_ih + b_hh (resident)
    whh_ref:    (Hp, Hp)    bf16  W_hh^T (resident)
    h0_ref:     (Bp, Hp)    f32   initial hidden state (used on first chunk)
    y_ref:      (tc, Bp, Hp)      per-step hidden states (bf16 or f32)
    h_scratch:  VMEM (Bp, Hp) f32 running hidden state, persists across chunks
    xw_scratch: VMEM (tc*Bp, Hp) f32 chunk's input projection
    """
    tc = y_ref.shape[0]
    Bp = h0_ref.shape[0]

    @pl.when(pl.program_id(0) == 0)
    def _():
        h_scratch[...] = h0_ref[...]

    # Fused input projection for the whole chunk, off the serial critical
    # path: one (tc*Bp, Dp) x (Dp, Hp) bf16 matmul with f32 accumulation,
    # bias folded in.  Stays in VMEM; never round-trips through HBM.
    xw_scratch[...] = (
        jnp.dot(x_ref[...], wih_ref[...], preferred_element_type=jnp.float32)
        + bias_ref[...])

    # Serial recurrence.  h lives in vregs within the chunk; h_scratch is read
    # once here and written once at the end of the chunk.
    h = h_scratch[...]

    def step(t, h):
        row = pl.multiple_of(t * Bp, Bp)
        pre = xw_scratch[pl.ds(row, Bp), :] + jnp.dot(
            h.astype(whh_ref.dtype), whh_ref[...],
            preferred_element_type=jnp.float32)
        h_new = jnp.tanh(pre)
        y_ref[t] = h_new.astype(y_ref.dtype)
        return h_new

    h = lax.fori_loop(0, tc, step, h, unroll=min(8, tc))
    h_scratch[...] = h


def _rnn_layer(x3, wih_t, bias, whh_t, h0, *, time_chunk, out_dtype):
    """Run one RNN layer over padded input.

    x3: (Tp, Bp, Dp) bf16; returns y: (Tp, Bp, Hp) out_dtype.
    """
    Tp, Bp, Dp = x3.shape
    Hp = whh_t.shape[1]
    tc = time_chunk
    assert Tp % tc == 0
    grid = (Tp // tc,)

    # Lane-dense 2-D slab for the fused projection (wrapper-side reshape is
    # layout plumbing; avoids in-kernel reshapes).
    x2 = x3.reshape(Tp * Bp, Dp)

    out_bytes = jnp.dtype(out_dtype).itemsize
    est = (2 * tc * Bp * Dp * 2                 # double-buffered x chunks (bf16)
           + 2 * tc * Bp * Hp * out_bytes       # double-buffered y chunks
           + 2 * (Dp * Hp + Hp * Hp) * 2        # resident W_ih^T / W_hh^T (bf16)
           + 2 * (Hp + Bp * Hp) * 4             # resident bias / h0 (f32)
           + (Bp * Hp + tc * Bp * Hp) * 4)      # h / xw VMEM scratch (f32)
    vmem_limit = int(min(max(2 * est, 16 * 2**20), 64 * 2**20))

    return pl.pallas_call(
        _rnn_layer_kernel,
        out_shape=jax.ShapeDtypeStruct((Tp, Bp, Hp), out_dtype),
        grid_spec=pltpu.PrefetchScalarGridSpec(
            num_scalar_prefetch=0,
            grid=grid,
            in_specs=[
                pl.BlockSpec((tc * Bp, Dp), lambda t: (t, 0)),   # streamed x
                pl.BlockSpec((Dp, Hp), lambda t: (0, 0)),        # W_ih^T
                pl.BlockSpec((1, Hp), lambda t: (0, 0)),         # bias
                pl.BlockSpec((Hp, Hp), lambda t: (0, 0)),        # W_hh^T
                pl.BlockSpec((Bp, Hp), lambda t: (0, 0)),        # h0
            ],
            out_specs=pl.BlockSpec((tc, Bp, Hp), lambda t: (t, 0, 0)),
            scratch_shapes=[
                pltpu.VMEM((Bp, Hp), jnp.float32),        # running h
                pltpu.VMEM((tc * Bp, Hp), jnp.float32),   # chunk xw
            ],
        ),
        compiler_params=pltpu.CompilerParams(
            dimension_semantics=("arbitrary",),
            vmem_limit_bytes=vmem_limit),
    )(x2, wih_t, bias, whh_t, h0)


def _pick_time_chunk(T, Bp, Hp, Dp, max_time_chunk):
    """Largest chunk <= max_time_chunk that keeps the VMEM estimate modest."""
    tc = max(1, min(max_time_chunk, T))

    def est(c):
        return (2 * c * Bp * Dp * 2 + 2 * c * Bp * Hp * 4
                + 2 * (Dp * Hp + Hp * Hp) * 2
                + 2 * (Hp + Bp * Hp) * 4
                + (Bp * Hp + c * Bp * Hp) * 4)

    while tc > 1 and est(tc) > 24 * 2**20:
        tc = max(1, tc // 2)
    return tc


def init_rnn_params(key, input_size, hidden_size, num_layers):
    """Deterministic init matching PyTorch nn.RNN shapes (uniform(+-1/sqrt(H)))."""
    params = []
    bound = 1.0 / math.sqrt(hidden_size)
    for layer in range(num_layers):
        in_dim = input_size if layer == 0 else hidden_size
        key, k1, k2, k3, k4 = jax.random.split(key, 5)
        w_ih = jax.random.uniform(k1, (hidden_size, in_dim),
                                  minval=-bound, maxval=bound, dtype=jnp.float32)
        w_hh = jax.random.uniform(k2, (hidden_size, hidden_size),
                                  minval=-bound, maxval=bound, dtype=jnp.float32)
        b_ih = jax.random.uniform(k3, (hidden_size,),
                                  minval=-bound, maxval=bound, dtype=jnp.float32)
        b_hh = jax.random.uniform(k4, (hidden_size,),
                                  minval=-bound, maxval=bound, dtype=jnp.float32)
        params.append((w_ih, w_hh, b_ih, b_hh))
    return params


def generator_forward(x, params, h0=None, *, max_time_chunk=32):
    """Equivalent of Generator.forward / running_forward.

    x: (T, B, input_size); h0: optional (num_layers, B, H).
    Returns (y: (T, B, H) f32, h_out: (num_layers, B, H) f32).
    """
    T, B, in_dim0 = x.shape
    H = params[0][0].shape[0]
    L = len(params)
    if h0 is None:
        h0 = jnp.zeros((L, B, H), jnp.float32)

    Bp = _round_up(B, _SUBLANE_BF16)
    Hp = _round_up(H, _LANE)
    Dp0 = _round_up(in_dim0, _LANE)
    tc = _pick_time_chunk(T, Bp, Hp, max(Dp0, Hp), max_time_chunk)
    Tp = _round_up(T, tc)

    # Pad time / batch / features once; zero padding keeps the padded hidden
    # columns exactly zero, and padded rows / time steps are never read.
    inp = jnp.zeros((Tp, Bp, Dp0), jnp.bfloat16)
    inp = inp.at[:T, :B, :in_dim0].set(x.astype(jnp.bfloat16))

    h_finals = []
    for l, (w_ih, w_hh, b_ih, b_hh) in enumerate(params):
        d_in = w_ih.shape[1]
        Dp = inp.shape[-1]
        wih_t = jnp.zeros((Dp, Hp), jnp.bfloat16)
        wih_t = wih_t.at[:d_in, :H].set(w_ih.T.astype(jnp.bfloat16))
        whh_t = jnp.zeros((Hp, Hp), jnp.bfloat16)
        whh_t = whh_t.at[:H, :H].set(w_hh.T.astype(jnp.bfloat16))
        bias = jnp.zeros((1, Hp), jnp.float32).at[0, :H].set(
            (b_ih + b_hh).astype(jnp.float32))
        h0_p = jnp.zeros((Bp, Hp), jnp.float32).at[:B, :H].set(
            h0[l].astype(jnp.float32))

        last = (l == L - 1)
        out_dtype = jnp.float32 if last else jnp.bfloat16
        y_pad = _rnn_layer(inp, wih_t, bias, whh_t, h0_p,
                           time_chunk=tc, out_dtype=out_dtype)
        # Final hidden state of this layer == y[T-1] (padded steps never read).
        h_finals.append(y_pad[T - 1, :B, :H].astype(jnp.float32))
        inp = y_pad  # stays padded (bf16 for intermediate layers)

    y = inp[:T, :B, :H].astype(jnp.float32)
    h_out = jnp.stack(h_finals, axis=0)
    return y, h_out


def _reference_forward(x, params, h0=None):
    """Pure-JAX reference with matched precision (bf16 operands, f32 accum,
    bf16 intermediate-layer outputs)."""
    T, B, _ = x.shape
    H = params[0][0].shape[0]
    L = len(params)
    if h0 is None:
        h0 = jnp.zeros((L, B, H), jnp.float32)
    layer_in = x.astype(jnp.bfloat16)
    h_finals = []
    y_last = None
    for l, (w_ih, w_hh, b_ih, b_hh) in enumerate(params):
        bias = (b_ih + b_hh).astype(jnp.float32)
        xw = jnp.einsum("tbd,dh->tbh", layer_in,
                        w_ih.T.astype(jnp.bfloat16),
                        preferred_element_type=jnp.float32) + bias
        whh_t = w_hh.T.astype(jnp.bfloat16)
        h = h0[l].astype(jnp.float32)
        ys = []
        for t in range(T):
            h = jnp.tanh(xw[t] + jnp.dot(h.astype(jnp.bfloat16), whh_t,
                                         preferred_element_type=jnp.float32))
            ys.append(h)
        y_l = jnp.stack(ys, axis=0)
        if l < L - 1:
            y_bf = y_l.astype(jnp.bfloat16)
            h_finals.append(y_bf[T - 1].astype(jnp.float32))
            layer_in = y_bf
        else:
            h_finals.append(h)
            y_last = y_l
    return y_last, jnp.stack(h_finals, axis=0)


def _reference_forward_f32(x, params, h0=None):
    """Full-f32 reference (PyTorch nn.RNN math)."""
    T, B, _ = x.shape
    H = params[0][0].shape[0]
    L = len(params)
    if h0 is None:
        h0 = jnp.zeros((L, B, H), jnp.float32)
    layer_in = x.astype(jnp.float32)
    h_finals = []
    for l, (w_ih, w_hh, b_ih, b_hh) in enumerate(params):
        h = h0[l].astype(jnp.float32)
        ys = []
        for t in range(T):
            h = jnp.tanh(layer_in[t] @ w_ih.T + b_ih + h @ w_hh.T + b_hh)
            ys.append(h)
        layer_in = jnp.stack(ys, axis=0)
        h_finals.append(h)
    return layer_in, jnp.stack(h_finals, axis=0)


if __name__ == "__main__":
    # Small shapes: seq=8, batch=2, input_size=16, hidden_size=32, num_layers=2
    T, B, I, H, L = 8, 2, 16, 32, 2

    key = jax.random.PRNGKey(0)
    key, kx = jax.random.split(key)
    x = jax.random.normal(kx, (T, B, I), dtype=jnp.float32)
    params = init_rnn_params(jax.random.PRNGKey(0), I, H, L)

    y, h_out = generator_forward(x, params)
    y, h_out = jax.block_until_ready((y, h_out))

    assert y.shape == (T, B, H), y.shape
    assert h_out.shape == (L, B, H), h_out.shape

    # Matched-precision reference (bf16 operands, f32 accumulation, bf16
    # intermediate-layer outputs).
    y_ref, h_ref = _reference_forward(x, params)
    assert jnp.allclose(y, y_ref, atol=3e-3, rtol=3e-3), \
        float(jnp.max(jnp.abs(y - y_ref)))
    assert jnp.allclose(h_out, h_ref, atol=3e-3, rtol=3e-3), \
        float(jnp.max(jnp.abs(h_out - h_ref)))

    # Semantic sanity check vs. full-f32 math (loose: bf16 operand rounding).
    y_f32, h_f32 = _reference_forward_f32(x, params)
    assert jnp.allclose(y, y_f32, atol=5e-2, rtol=5e-2)
    assert jnp.allclose(h_out, h_f32, atol=5e-2, rtol=5e-2)

    # running_forward semantics: feed the previous h_out back in.
    y2, h_out2 = generator_forward(x, params, h0=h_out)
    y2, h_out2 = jax.block_until_ready((y2, h_out2))
    y2_ref, h2_ref = _reference_forward(x, params, h0=h_out)
    assert jnp.allclose(y2, y2_ref, atol=3e-3, rtol=3e-3)
    assert jnp.allclose(h_out2, h2_ref, atol=3e-3, rtol=3e-3)

    print("KERNEL_OK")
</pallas_src>

<mosaic_0001>
module attributes {stable_mosaic.version = 11 : i64} {
  func.func @_rnn_layer_kernel(%arg0: i32, %arg1: memref<128x128xbf16, #tpu.memory_space<vmem>>, %arg2: memref<128x128xbf16, #tpu.memory_space<vmem>>, %arg3: memref<1x128xf32, #tpu.memory_space<vmem>>, %arg4: memref<128x128xbf16, #tpu.memory_space<vmem>>, %arg5: memref<16x128xf32, #tpu.memory_space<vmem>>, %arg6: memref<8x16x128xbf16, #tpu.memory_space<vmem>>, %arg7: memref<16x128xf32, #tpu.memory_space<vmem>>, %arg8: memref<128x128xf32, #tpu.memory_space<vmem>>) attributes {dimension_semantics = [#tpu.dimension_semantics<arbitrary>], iteration_bounds = array<i64: 1>, scalar_prefetch = 0 : i64, scratch_operands = 2 : i64, tpu.core_type = #tpu.core_type<tc>, window_params = [{transform_indices = @transform_0, window_bounds = array<i64: 128, 128>}, {pipeline_mode = #tpu.pipeline_mode<synchronous>, transform_indices = @transform_1, window_bounds = array<i64: 128, 128>}, {pipeline_mode = #tpu.pipeline_mode<synchronous>, transform_indices = @transform_2, window_bounds = array<i64: 1, 128>}, {pipeline_mode = #tpu.pipeline_mode<synchronous>, transform_indices = @transform_3, window_bounds = array<i64: 128, 128>}, {pipeline_mode = #tpu.pipeline_mode<synchronous>, transform_indices = @transform_4, window_bounds = array<i64: 16, 128>}, {transform_indices = @transform_5, window_bounds = array<i64: 8, 16, 128>}]} {
    %c0_i32 = arith.constant 0 : i32
    %0 = arith.cmpi eq, %arg0, %c0_i32 : i32
    %1 = arith.extui %0 : i1 to i32
    %c0_i32_0 = arith.constant 0 : i32
    %2 = arith.cmpi ne, %1, %c0_i32_0 : i32
    scf.if %2 {
      %c0_68 = arith.constant 0 : index
      %c0_69 = arith.constant 0 : index
      %124 = vector.load %arg5[%c0_68, %c0_69] : memref<16x128xf32, #tpu.memory_space<vmem>>, vector<16x128xf32>
      %c0_70 = arith.constant 0 : index
      %c0_71 = arith.constant 0 : index
      %125 = vector.load %arg7[%c0_70, %c0_71] : memref<16x128xf32, #tpu.memory_space<vmem>>, vector<16x128xf32>
      tpu.vector_store %arg7[%c0_70, %c0_71], %124 {strides = array<i32>} : memref<16x128xf32, #tpu.memory_space<vmem>>, vector<16x128xf32>,
    } else {
    }
    %c0 = arith.constant 0 : index
    %c0_1 = arith.constant 0 : index
    %3 = vector.load %arg1[%c0, %c0_1] : memref<128x128xbf16, #tpu.memory_space<vmem>>, vector<128x128xbf16>
    %c0_2 = arith.constant 0 : index
    %c0_3 = arith.constant 0 : index
    %4 = vector.load %arg2[%c0_2, %c0_3] : memref<128x128xbf16, #tpu.memory_space<vmem>>, vector<128x128xbf16>
    %cst = arith.constant dense<0.000000e+00> : vector<128x128xf32>
    %5 = tpu.matmul %3, %4, %cst {dimension_numbers = #tpu.dot_dimension_numbers<[1], [0], [0], [1], [0, 0, 1, 1], [], []>} : vector<128x128xbf16>, vector<128x128xbf16>, vector<128x128xf32> -> vector<128x128xf32>
    %c0_4 = arith.constant 0 : index
    %c0_5 = arith.constant 0 : index
    %6 = vector.load %arg3[%c0_4, %c0_5] : memref<1x128xf32, #tpu.memory_space<vmem>>, vector<1x128xf32>
    %7 = vector.broadcast %6 : vector<1x128xf32> to vector<128x128xf32>
    %8 = arith.addf %5, %7 : vector<128x128xf32>
    %c0_6 = arith.constant 0 : index
    %c0_7 = arith.constant 0 : index
    %9 = vector.load %arg8[%c0_6, %c0_7] : memref<128x128xf32, #tpu.memory_space<vmem>>, vector<128x128xf32>
    tpu.vector_store %arg8[%c0_6, %c0_7], %8 {strides = array<i32>} : memref<128x128xf32, #tpu.memory_space<vmem>>, vector<128x128xf32>,
    %c0_8 = arith.constant 0 : index
    %c0_9 = arith.constant 0 : index
    %10 = vector.load %arg7[%c0_8, %c0_9] : memref<16x128xf32, #tpu.memory_space<vmem>>, vector<16x128xf32>
    %c0_i32_10 = arith.constant 0 : i32
    %c16_i32 = arith.constant 16 : i32
    %11 = arith.muli %c0_i32_10, %c16_i32 : i32
    %12 = tpu.assume_multiple %11, 16 : i32
    %13 = arith.index_cast %12 : i32 to index
    %c0_11 = arith.constant 0 : index
    %14 = vector.load %arg8[%13, %c0_11] : memref<128x128xf32, #tpu.memory_space<vmem>>, vector<16x128xf32>
    %15 = arith.truncf %10 : vector<16x128xf32> to vector<16x128xbf16>
    %c0_12 = arith.constant 0 : index
    %c0_13 = arith.constant 0 : index
    %16 = vector.load %arg4[%c0_12, %c0_13] : memref<128x128xbf16, #tpu.memory_space<vmem>>, vector<128x128xbf16>
    %cst_14 = arith.constant dense<0.000000e+00> : vector<16x128xf32>
    %17 = tpu.matmul %15, %16, %cst_14 {dimension_numbers = #tpu.dot_dimension_numbers<[1], [0], [0], [1], [0, 0, 1, 1], [], []>} : vector<16x128xbf16>, vector<128x128xbf16>, vector<16x128xf32> -> vector<16x128xf32>
    %18 = arith.addf %14, %17 : vector<16x128xf32>
    %19 = math.tanh %18 : vector<16x128xf32>
    %20 = arith.truncf %19 : vector<16x128xf32> to vector<16x128xbf16>
    %21 = arith.index_cast %c0_i32_10 : i32 to index
    %c0_15 = arith.constant 0 : index
    %c0_16 = arith.constant 0 : index
    %22 = vector.load %arg6[%21, %c0_15, %c0_16] : memref<8x16x128xbf16, #tpu.memory_space<vmem>>, vector<1x16x128xbf16>
    %23 = vector.shape_cast %22 : vector<1x16x128xbf16> to vector<16x128xbf16>
    %24 = vector.shape_cast %20 : vector<16x128xbf16> to vector<1x16x128xbf16>
    tpu.vector_store %arg6[%21, %c0_15, %c0_16], %24 {strides = array<i32>} : memref<8x16x128xbf16, #tpu.memory_space<vmem>>, vector<1x16x128xbf16>,
    %c1_i32 = arith.constant 1 : i32
    %c16_i32_17 = arith.constant 16 : i32
    %25 = arith.muli %c1_i32, %c16_i32_17 : i32
    %26 = tpu.assume_multiple %25, 16 : i32
    %27 = arith.index_cast %26 : i32 to index
    %c0_18 = arith.constant 0 : index
    %28 = vector.load %arg8[%27, %c0_18] : memref<128x128xf32, #tpu.memory_space<vmem>>, vector<16x128xf32>
    %29 = arith.truncf %19 : vector<16x128xf32> to vector<16x128xbf16>
    %c0_19 = arith.constant 0 : index
    %c0_20 = arith.constant 0 : index
    %30 = vector.load %arg4[%c0_19, %c0_20] : memref<128x128xbf16, #tpu.memory_space<vmem>>, vector<128x128xbf16>
    %cst_21 = arith.constant dense<0.000000e+00> : vector<16x128xf32>
    %31 = tpu.matmul %29, %30, %cst_21 {dimension_numbers = #tpu.dot_dimension_numbers<[1], [0], [0], [1], [0, 0, 1, 1], [], []>} : vector<16x128xbf16>, vector<128x128xbf16>, vector<16x128xf32> -> vector<16x128xf32>
    %32 = arith.addf %28, %31 : vector<16x128xf32>
    %33 = math.tanh %32 : vector<16x128xf32>
    %34 = arith.truncf %33 : vector<16x128xf32> to vector<16x128xbf16>
    %35 = arith.index_cast %c1_i32 : i32 to index
    %c0_22 = arith.constant 0 : index
    %c0_23 = arith.constant 0 : index
    %36 = vector.load %arg6[%35, %c0_22, %c0_23] : memref<8x16x128xbf16, #tpu.memory_space<vmem>>, vector<1x16x128xbf16>
    %37 = vector.shape_cast %36 : vector<1x16x128xbf16> to vector<16x128xbf16>
    %38 = vector.shape_cast %34 : vector<16x128xbf16> to vector<1x16x128xbf16>
    tpu.vector_store %arg6[%35, %c0_22, %c0_23], %38 {strides = array<i32>} : memref<8x16x128xbf16, #tpu.memory_space<vmem>>, vector<1x16x128xbf16>,
    %c2_i32 = arith.constant 2 : i32
    %c16_i32_24 = arith.constant 16 : i32
    %39 = arith.muli %c2_i32, %c16_i32_24 : i32
    %40 = tpu.assume_multiple %39, 16 : i32
    %41 = arith.index_cast %40 : i32 to index
    %c0_25 = arith.constant 0 : index
    %42 = vector.load %arg8[%41, %c0_25] : memref<128x128xf32, #tpu.memory_space<vmem>>, vector<16x128xf32>
    %43 = arith.truncf %33 : vector<16x128xf32> to vector<16x128xbf16>
    %c0_26 = arith.constant 0 : index
    %c0_27 = arith.constant 0 : index
    %44 = vector.load %arg4[%c0_26, %c0_27] : memref<128x128xbf16, #tpu.memory_space<vmem>>, vector<128x128xbf16>
    %cst_28 = arith.constant dense<0.000000e+00> : vector<16x128xf32>
    %45 = tpu.matmul %43, %44, %cst_28 {dimension_numbers = #tpu.dot_dimension_numbers<[1], [0], [0], [1], [0, 0, 1, 1], [], []>} : vector<16x128xbf16>, vector<128x128xbf16>, vector<16x128xf32> -> vector<16x128xf32>
    %46 = arith.addf %42, %45 : vector<16x128xf32>
    %47 = math.tanh %46 : vector<16x128xf32>
    %48 = arith.truncf %47 : vector<16x128xf32> to vector<16x128xbf16>
    %49 = arith.index_cast %c2_i32 : i32 to index
    %c0_29 = arith.constant 0 : index
    %c0_30 = arith.constant 0 : index
    %50 = vector.load %arg6[%49, %c0_29, %c0_30] : memref<8x16x128xbf16, #tpu.memory_space<vmem>>, vector<1x16x128xbf16>
    %51 = vector.shape_cast %50 : vector<1x16x128xbf16> to vector<16x128xbf16>
    %52 = vector.shape_cast %48 : vector<16x128xbf16> to vector<1x16x128xbf16>
    tpu.vector_store %arg6[%49, %c0_29, %c0_30], %52 {strides = array<i32>} : memref<8x16x128xbf16, #tpu.memory_space<vmem>>, vector<1x16x128xbf16>,
    %c3_i32 = arith.constant 3 : i32
    %c16_i32_31 = arith.constant 16 : i32
    %53 = arith.muli %c3_i32, %c16_i32_31 : i32
    %54 = tpu.assume_multiple %53, 16 : i32
    %55 = arith.index_cast %54 : i32 to index
    %c0_32 = arith.constant 0 : index
    %56 = vector.load %arg8[%55, %c0_32] : memref<128x128xf32, #tpu.memory_space<vmem>>, vector<16x128xf32>
    %57 = arith.truncf %47 : vector<16x128xf32> to vector<16x128xbf16>
    %c0_33 = arith.constant 0 : index
    %c0_34 = arith.constant 0 : index
    %58 = vector.load %arg4[%c0_33, %c0_34] : memref<128x128xbf16, #tpu.memory_space<vmem>>, vector<128x128xbf16>
    %cst_35 = arith.constant dense<0.000000e+00> : vector<16x128xf32>
    %59 = tpu.matmul %57, %58, %cst_35 {dimension_numbers = #tpu.dot_dimension_numbers<[1], [0], [0], [1], [0, 0, 1, 1], [], []>} : vector<16x128xbf16>, vector<128x128xbf16>, vector<16x128xf32> -> vector<16x128xf32>
    %60 = arith.addf %56, %59 : vector<16x128xf32>
    %61 = math.tanh %60 : vector<16x128xf32>
    %62 = arith.truncf %61 : vector<16x128xf32> to vector<16x128xbf16>
    %63 = arith.index_cast %c3_i32 : i32 to index
    %c0_36 = arith.constant 0 : index
    %c0_37 = arith.constant 0 : index
    %64 = vector.load %arg6[%63, %c0_36, %c0_37] : memref<8x16x128xbf16, #tpu.memory_space<vmem>>, vector<1x16x128xbf16>
    %65 = vector.shape_cast %64 : vector<1x16x128xbf16> to vector<16x128xbf16>
    %66 = vector.shape_cast %62 : vector<16x128xbf16> to vector<1x16x128xbf16>
    tpu.vector_store %arg6[%63, %c0_36, %c0_37], %66 {strides = array<i32>} : memref<8x16x128xbf16, #tpu.memory_space<vmem>>, vector<1x16x128xbf16>,
    %c4_i32 = arith.constant 4 : i32
    %c16_i32_38 = arith.constant 16 : i32
    %67 = arith.muli %c4_i32, %c16_i32_38 : i32
    %68 = tpu.assume_multiple %67, 16 : i32
    %69 = arith.index_cast %68 : i32 to index
    %c0_39 = arith.constant 0 : index
    %70 = vector.load %arg8[%69, %c0_39] : memref<128x128xf32, #tpu.memory_space<vmem>>, vector<16x128xf32>
    %71 = arith.truncf %61 : vector<16x128xf32> to vector<16x128xbf16>
    %c0_40 = arith.constant 0 : index
    %c0_41 = arith.constant 0 : index
    %72 = vector.load %arg4[%c0_40, %c0_41] : memref<128x128xbf16, #tpu.memory_space<vmem>>, vector<128x128xbf16>
    %cst_42 = arith.constant dense<0.000000e+00> : vector<16x128xf32>
    %73 = tpu.matmul %71, %72, %cst_42 {dimension_numbers = #tpu.dot_dimension_numbers<[1], [0], [0], [1], [0, 0, 1, 1], [], []>} : vector<16x128xbf16>, vector<128x128xbf16>, vector<16x128xf32> -> vector<16x128xf32>
    %74 = arith.addf %70, %73 : vector<16x128xf32>
    %75 = math.tanh %74 : vector<16x128xf32>
    %76 = arith.truncf %75 : vector<16x128xf32> to vector<16x128xbf16>
    %77 = arith.index_cast %c4_i32 : i32 to index
    %c0_43 = arith.constant 0 : index
    %c0_44 = arith.constant 0 : index
    %78 = vector.load %arg6[%77, %c0_43, %c0_44] : memref<8x16x128xbf16, #tpu.memory_space<vmem>>, vector<1x16x128xbf16>
    %79 = vector.shape_cast %78 : vector<1x16x128xbf16> to vector<16x128xbf16>
    %80 = vector.shape_cast %76 : vector<16x128xbf16> to vector<1x16x128xbf16>
    tpu.vector_store %arg6[%77, %c0_43, %c0_44], %80 {strides = array<i32>} : memref<8x16x128xbf16, #tpu.memory_space<vmem>>, vector<1x16x128xbf16>,
    %c5_i32 = arith.constant 5 : i32
    %c16_i32_45 = arith.constant 16 : i32
    %81 = arith.muli %c5_i32, %c16_i32_45 : i32
    %82 = tpu.assume_multiple %81, 16 : i32
    %83 = arith.index_cast %82 : i32 to index
    %c0_46 = arith.constant 0 : index
    %84 = vector.load %arg8[%83, %c0_46] : memref<128x128xf32, #tpu.memory_space<vmem>>, vector<16x128xf32>
    %85 = arith.truncf %75 : vector<16x128xf32> to vector<16x128xbf16>
    %c0_47 = arith.constant 0 : index
    %c0_48 = arith.constant 0 : index
    %86 = vector.load %arg4[%c0_47, %c0_48] : memref<128x128xbf16, #tpu.memory_space<vmem>>, vector<128x128xbf16>
    %cst_49 = arith.constant dense<0.000000e+00> : vector<16x128xf32>
    %87 = tpu.matmul %85, %86, %cst_49 {dimension_numbers = #tpu.dot_dimension_numbers<[1], [0], [0], [1], [0, 0, 1, 1], [], []>} : vector<16x128xbf16>, vector<128x128xbf16>, vector<16x128xf32> -> vector<16x128xf32>
    %88 = arith.addf %84, %87 : vector<16x128xf32>
    %89 = math.tanh %88 : vector<16x128xf32>
    %90 = arith.truncf %89 : vector<16x128xf32> to vector<16x128xbf16>
    %91 = arith.index_cast %c5_i32 : i32 to index
    %c0_50 = arith.constant 0 : index
    %c0_51 = arith.constant 0 : index
    %92 = vector.load %arg6[%91, %c0_50, %c0_51] : memref<8x16x128xbf16, #tpu.memory_space<vmem>>, vector<1x16x128xbf16>
    %93 = vector.shape_cast %92 : vector<1x16x128xbf16> to vector<16x128xbf16>
    %94 = vector.shape_cast %90 : vector<16x128xbf16> to vector<1x16x128xbf16>
    tpu.vector_store %arg6[%91, %c0_50, %c0_51], %94 {strides = array<i32>} : memref<8x16x128xbf16, #tpu.memory_space<vmem>>, vector<1x16x128xbf16>,
    %c6_i32 = arith.constant 6 : i32
    %c16_i32_52 = arith.constant 16 : i32
    %95 = arith.muli %c6_i32, %c16_i32_52 : i32
    %96 = tpu.assume_multiple %95, 16 : i32
    %97 = arith.index_cast %96 : i32 to index
    %c0_53 = arith.constant 0 : index
    %98 = vector.load %arg8[%97, %c0_53] : memref<128x128xf32, #tpu.memory_space<vmem>>, vector<16x128xf32>
    %99 = arith.truncf %89 : vector<16x128xf32> to vector<16x128xbf16>
    %c0_54 = arith.constant 0 : index
    %c0_55 = arith.constant 0 : index
    %100 = vector.load %arg4[%c0_54, %c0_55] : memref<128x128xbf16, #tpu.memory_space<vmem>>, vector<128x128xbf16>
    %cst_56 = arith.constant dense<0.000000e+00> : vector<16x128xf32>
    %101 = tpu.matmul %99, %100, %cst_56 {dimension_numbers = #tpu.dot_dimension_numbers<[1], [0], [0], [1], [0, 0, 1, 1], [], []>} : vector<16x128xbf16>, vector<128x128xbf16>, vector<16x128xf32> -> vector<16x128xf32>
    %102 = arith.addf %98, %101 : vector<16x128xf32>
    %103 = math.tanh %102 : vector<16x128xf32>
    %104 = arith.truncf %103 : vector<16x128xf32> to vector<16x128xbf16>
    %105 = arith.index_cast %c6_i32 : i32 to index
    %c0_57 = arith.constant 0 : index
    %c0_58 = arith.constant 0 : index
    %106 = vector.load %arg6[%105, %c0_57, %c0_58] : memref<8x16x128xbf16, #tpu.memory_space<vmem>>, vector<1x16x128xbf16>
    %107 = vector.shape_cast %106 : vector<1x16x128xbf16> to vector<16x128xbf16>
    %108 = vector.shape_cast %104 : vector<16x128xbf16> to vector<1x16x128xbf16>
    tpu.vector_store %arg6[%105, %c0_57, %c0_58], %108 {strides = array<i32>} : memref<8x16x128xbf16, #tpu.memory_space<vmem>>, vector<1x16x128xbf16>,
    %c7_i32 = arith.constant 7 : i32
    %c16_i32_59 = arith.constant 16 : i32
    %109 = arith.muli %c7_i32, %c16_i32_59 : i32
    %110 = tpu.assume_multiple %109, 16 : i32
    %111 = arith.index_cast %110 : i32 to index
    %c0_60 = arith.constant 0 : index
    %112 = vector.load %arg8[%111, %c0_60] : memref<128x128xf32, #tpu.memory_space<vmem>>, vector<16x128xf32>
    %113 = arith.truncf %103 : vector<16x128xf32> to vector<16x128xbf16>
    %c0_61 = arith.constant 0 : index
    %c0_62 = arith.constant 0 : index
    %114 = vector.load %arg4[%c0_61, %c0_62] : memref<128x128xbf16, #tpu.memory_space<vmem>>, vector<128x128xbf16>
    %cst_63 = arith.constant dense<0.000000e+00> : vector<16x128xf32>
    %115 = tpu.matmul %113, %114, %cst_63 {dimension_numbers = #tpu.dot_dimension_numbers<[1], [0], [0], [1], [0, 0, 1, 1], [], []>} : vector<16x128xbf16>, vector<128x128xbf16>, vector<16x128xf32> -> vector<16x128xf32>
    %116 = arith.addf %112, %115 : vector<16x128xf32>
    %117 = math.tanh %116 : vector<16x128xf32>
    %118 = arith.truncf %117 : vector<16x128xf32> to vector<16x128xbf16>
    %119 = arith.index_cast %c7_i32 : i32 to index
    %c0_64 = arith.constant 0 : index
    %c0_65 = arith.constant 0 : index
    %120 = vector.load %arg6[%119, %c0_64, %c0_65] : memref<8x16x128xbf16, #tpu.memory_space<vmem>>, vector<1x16x128xbf16>
    %121 = vector.shape_cast %120 : vector<1x16x128xbf16> to vector<16x128xbf16>
    %122 = vector.shape_cast %118 : vector<16x128xbf16> to vector<1x16x128xbf16>
    tpu.vector_store %arg6[%119, %c0_64, %c0_65], %122 {strides = array<i32>} : memref<8x16x128xbf16, #tpu.memory_space<vmem>>, vector<1x16x128xbf16>,
    %c8_i32 = arith.constant 8 : i32
    %c0_66 = arith.constant 0 : index
    %c0_67 = arith.constant 0 : index
    %123 = vector.load %arg7[%c0_66, %c0_67] : memref<16x128xf32, #tpu.memory_space<vmem>>, vector<16x128xf32>
    tpu.vector_store %arg7[%c0_66, %c0_67], %117 {strides = array<i32>} : memref<16x128xf32, #tpu.memory_space<vmem>>, vector<16x128xf32>,
    return
  }
  func.func @transform_0(%arg0: i32) -> (i32, i32) {
    %c0_i32 = arith.constant 0 : i32
    %c0_i32_0 = arith.constant 0 : i32
    return %arg0, %c0_i32 : i32, i32
  }
  func.func @transform_1(%arg0: i32) -> (i32, i32) {
    %c0_i32 = arith.constant 0 : i32
    %c0_i32_0 = arith.constant 0 : i32
    %c0_i32_1 = arith.constant 0 : i32
    return %c0_i32, %c0_i32_0 : i32, i32
  }
  func.func @transform_2(%arg0: i32) -> (i32, i32) {
    %c0_i32 = arith.constant 0 : i32
    %c0_i32_0 = arith.constant 0 : i32
    %c0_i32_1 = arith.constant 0 : i32
    return %c0_i32, %c0_i32_0 : i32, i32
  }
  func.func @transform_3(%arg0: i32) -> (i32, i32) {
    %c0_i32 = arith.constant 0 : i32
    %c0_i32_0 = arith.constant 0 : i32
    %c0_i32_1 = arith.constant 0 : i32
    return %c0_i32, %c0_i32_0 : i32, i32
  }
  func.func @transform_4(%arg0: i32) -> (i32, i32) {
    %c0_i32 = arith.constant 0 : i32
    %c0_i32_0 = arith.constant 0 : i32
    %c0_i32_1 = arith.constant 0 : i32
    return %c0_i32, %c0_i32_0 : i32, i32
  }
  func.func @transform_5(%arg0: i32) -> (i32, i32, i32) {
    %c0_i32 = arith.constant 0 : i32
    %c0_i32_0 = arith.constant 0 : i32
    %c0_i32_1 = arith.constant 0 : i32
    return %arg0, %c0_i32, %c0_i32_0 : i32, i32, i32
  }
}

</mosaic_0001>

<bundles_post_ra>
// kernel: tpu_custom_call.1
= control target key start
LH: loop header
LB: loop body
LE: loop exit
PB: predicated region body
PF: predicated region fallthrough
CT: control target
= control target key end

     0   :  { %10 = vsyncpa [#allocation5], 0  ;;  %s2277_s0 = inlined_call_operand.hbm [shape: bf16[128,128], index: 0, kind: input, shape index: {}]   ;;  %s2278_s1 = inlined_call_operand.hbm [shape: bf16[128,128], index: 1, kind: input, shape index: {}]   ;;  %s2279_s2 = inlined_call_operand.vmem [shape: f32[1,128], index: 2, kind: input, shape index: {}]   ;;  %s2280_s3 = inlined_call_operand.hbm [shape: bf16[128,128], index: 3, kind: input, shape index: {}]   ;;  %s2281_s4 = inlined_call_operand.hbm [shape: f32[16,128], index: 4, kind: input, shape index: {}]   ;;  %s2282_s5 = inlined_call_operand.hbm [shape: bf16[8,16,128], index: 5, kind: output, shape index: {}]  }
   0x1   :  { %11 = vsyncpa [#allocation8], 0 }
   0x2   :  { %12 = vsyncpa [#allocation11], 0 }
   0x3   :  { %13 = vsyncpa [#allocation6], 0  ;;  %s2013_s18 = smov [#allocation7]   ;;  %s2014_s20 = smov [#allocation4]  }
   0x4   :  { %s31_s19 = sshll.u32 %s2013_s18, 4  ;;  %s19_s21 = sshll.u32 %s2014_s20, 4  ;;  %s32_s19 = int_to_ptr.vmem [resolvable:$true] %s31_s19  ;;  %s2054_s21 = int_to_ptr.vmem [resolvable:$true] %s19_s21 }
   0x5   :  { %s1895_s24 = scalar_lea.hbm %s2278_s1, 1024 }
   0x6   :  { %p1896_p0 = scmp.ne.s32.totalorder %s2278_s1, %s1895_s24  ;;  %p1899_p1 = scmp.lt.u32.totalorder %s1895_s24, %s2278_s1 }
   0x8   :  { %p1901_p2 = pnand %p1899_p1, %p1896_p0 }
   0xa   :  { %1904 = shalt.err (!%p1901_p2)
}
   0xb   :  { %s1905_s29 = scalar_lea.vmem %s32_s19, 1024  ;;  %p1910_p4 = scmp.lt.s32.totalorder %s32_s19, %s32_s19 }
   0xc   :  { %p1906_p3 = scmp.ne.s32.totalorder %s32_s19, %s1905_s29  ;;  %p1911_p5 = scmp.lt.s32.totalorder %s1905_s29, %s1905_s29 }
   0xe   :  { %p1912_p6 = por %p1911_p5, %p1910_p4 }
  0x10   :  { %p1913_p7 = pnand %p1912_p6, %p1906_p3 }
  0x12   :  { %1916 = shalt.err (!%p1913_p7)
}
  0x13   :  { %s2015_s30 = smov 64   ;;  %s2016_s6 = smov 4  }
  0x14   :  { %37 = dma.hbm_to_vmem [thread:$0]  %s2278_s1, 1024, %s32_s19, [#allocation8], %s2015_s30, %s2015_s30, %s2016_s6  }
  0x15   :  { %s1917_s11 = scalar_lea.hbm %s2277_s0, 1024 }
  0x16   :  { %p1918_p8 = scmp.ne.s32.totalorder %s2277_s0, %s1917_s11  ;;  %p1921_p9 = scmp.lt.u32.totalorder %s1917_s11, %s2277_s0 }
  0x18   :  { %p1923_p10 = pnand %p1921_p9, %p1918_p8 }
  0x1a   :  { %1926 = shalt.err (!%p1923_p10)
}
  0x1b   :  { %s1927_s16 = scalar_lea.vmem %s2054_s21, 1024  ;;  %p1932_p12 = scmp.lt.s32.totalorder %s2054_s21, %s2054_s21 }
  0x1c   :  { %p1928_p11 = scmp.ne.s32.totalorder %s2054_s21, %s1927_s16  ;;  %p1933_p13 = scmp.lt.s32.totalorder %s1927_s16, %s1927_s16 }
  0x1e   :  { %p1934_p0 = por %p1933_p13, %p1932_p12 }
  0x20   :  { %p1935_p1 = pnand %p1934_p0, %p1928_p11 }
  0x22   :  { %1938 = shalt.err (!%p1935_p1)
}
  0x23   :  { %25 = dma.hbm_to_vmem [thread:$0]  %s2277_s0, 1024, %s2054_s21, [#allocation5], %s2015_s30, %s2015_s30, %s2016_s6  }
  0x24   :  { %s2017_s18 = smov [#allocation9]   ;;  %s2018_s20 = smov [#allocation10]  }
  0x25   :  { %s45_s19 = sshll.u32 %s2017_s18, 4  ;;  %s57_s22 = sshll.u32 %s2018_s20, 4  ;;  %s46_s19 = int_to_ptr.vmem [resolvable:$true] %s45_s19  ;;  %s2091_s22 = int_to_ptr.vmem [resolvable:$true] %s57_s22 }
  0x26   :  { %s1939_s25 = scalar_lea.hbm %s2280_s3, 1024 }
  0x27   :  { %p1940_p2 = scmp.ne.s32.totalorder %s2280_s3, %s1939_s25  ;;  %p1943_p3 = scmp.lt.u32.totalorder %s1939_s25, %s2280_s3 }
  0x29   :  { %p1945_p4 = pnand %p1943_p3, %p1940_p2 }
  0x2b   :  { %1948 = shalt.err (!%p1945_p4)
}
  0x2c   :  { %s1949_s0 = scalar_lea.vmem %s46_s19, 1024  ;;  %p1954_p6 = scmp.lt.s32.totalorder %s46_s19, %s46_s19 }
  0x2d   :  { %p1950_p5 = scmp.ne.s32.totalorder %s46_s19, %s1949_s0  ;;  %p1955_p7 = scmp.lt.s32.totalorder %s1949_s0, %s1949_s0 }
  0x2f   :  { %p1956_p8 = por %p1955_p7, %p1954_p6 }
  0x31   :  { %p1957_p9 = pnand %p1956_p8, %p1950_p5 }
  0x33   :  { %1960 = shalt.err (!%p1957_p9)
}
  0x34   :  { %51 = dma.hbm_to_vmem [thread:$0]  %s2280_s3, 1024, %s46_s19, [#allocation8], %s2015_s30, %s2015_s30, %s2016_s6  }
  0x35   :  { %s1961_s10 = scalar_lea.hbm %s2281_s4, 256 }
  0x36   :  { %p1962_p10 = scmp.ne.s32.totalorder %s2281_s4, %s1961_s10  ;;  %p1965_p11 = scmp.lt.u32.totalorder %s1961_s10, %s2281_s4 }
  0x38   :  { %p1967_p12 = pnand %p1965_p11, %p1962_p10 }
  0x3a   :  { %1970 = shalt.err (!%p1967_p12)
}
  0x3b   :  { %s1971_s15 = scalar_lea.vmem %s2091_s22, 256  ;;  %p1976_p0 = scmp.lt.s32.totalorder %s2091_s22, %s2091_s22 }
  0x3c   :  { %p1972_p13 = scmp.ne.s32.totalorder %s2091_s22, %s1971_s15  ;;  %p1977_p1 = scmp.lt.s32.totalorder %s1971_s15, %s1971_s15 }
  0x3e   :  { %p1978_p2 = por %p1977_p1, %p1976_p0 }
  0x40   :  { %p1979_p3 = pnand %p1978_p2, %p1972_p13 }
  0x42   :  { %1982 = shalt.err (!%p1979_p3)
}
  0x43   :  { %s2019_s3 = smov 128   ;;  %s2020_s16 = smov 8  }
  0x44   :  { %63 = dma.hbm_to_vmem [thread:$0]  %s2281_s4, 256, %s2091_s22, [#allocation11], %s2019_s3, %s2019_s3, %s2020_s16  }
  0x45   :  { %2005 = dma.done.wait [#allocation5], 1024  }
  0x46   :  { %2006 = vsyncadd [#allocation5], 4294966272 }
  0x47   :  { %2007 = dma.done.wait [#allocation8], 2048  }
  0x48   :  { %2008 = vsyncadd [#allocation8], 4294965248 }
  0x49   :  { %2009 = dma.done.wait [#allocation11], 256  }
  0x4a   :  { %2010 = vsyncadd [#allocation11], 4294967040  ;;  %v2021_v0 = vmov 0.0   ;;  %vm2022_vm0 = vmmov 0   ;;  %v1783_v1 = vld [vmem:[#allocation7] sm:$0xff]   ;;  %v1785_v3 = vld [vmem:[#allocation7 + $0x8] sm:$0xff]  }
  0x4b   :  { %1612 = vmatprep.subr.bf16.mxu1 %v2021_v0  ;;  %1628 = vmatprep.mubr.msk.bf16.mxu1 %vm2022_vm0, %v2021_v0  ;;  %v1784_v2 = vld [vmem:[#allocation9] sm:$0xff]   ;;  %v1786_v4 = vld [vmem:[#allocation9 + $0x8] sm:$0xff]   ;;  %v1787_v5 = vld [vmem:[#allocation7 + $0x10] sm:$0xff]  }
  0x4c   :  { %1580 = vmatprep.subr.bf16.mxu0 %v1783_v1  ;;  %1613 = vmatpush3.bf16.msra.mxu1 %v1784_v2  ;;  %v1788_v6 = vld [vmem:[#allocation9 + $0x10] sm:$0xff]   ;;  %v1789_v7 = vld [vmem:[#allocation7 + $0x18] sm:$0xff]   ;;  %v1791_v9 = vld [vmem:[#allocation7 + $0x20] sm:$0xff]  }
  0x4d   :  { %1581 = vmatpush3.bf16.msra.mxu0 %v1783_v1  ;;  %1614 = vmatprep.subr.bf16.mxu1 %v2021_v0  ;;  %v1790_v8 = vld [vmem:[#allocation9 + $0x18] sm:$0xff]   ;;  %v1792_v10 = vld [vmem:[#allocation9 + $0x20] sm:$0xff]   ;;  %v1793_v11 = vld [vmem:[#allocation7 + $0x28] sm:$0xff]  }
  0x4e   :  { %1582 = vmatprep.subr.bf16.mxu0 %v1785_v3  ;;  %v1799_v12 = vld [vmem:[#allocation4] sm:$0xff]   ;;  %v1794_v13 = vld [vmem:[#allocation9 + $0x28] sm:$0xff]   ;;  %v1795_v14 = vld [vmem:[#allocation7 + $0x30] sm:$0xff]  }
  0x4f   :  { %1596 = vmatprep.mubr.bf16.mxu0 %v1799_v12  ;;  %v1796_v15 = vld [vmem:[#allocation9 + $0x30] sm:$0xff]   ;;  %v1797_v16 = vld [vmem:[#allocation7 + $0x38] sm:$0xff]   ;;  %v81_v18 = vld [vmem:[#allocation10] sm:$0xff] }
  0x50   :  { %1615 = vmatpush3.bf16.msra.mxu1 %v1786_v4  ;;  %v1798_v17 = vld [vmem:[#allocation9 + $0x38] sm:$0xff]   ;;  %v82_v19 = vld [vmem:[#allocation10 + $0x8] sm:$0xff]  ;;  %v1801_v21 = vld [vmem:[#allocation9] sm:$0xff]  }
  0x51   :  { %1583 = vmatpush3.bf16.msra.mxu0 %v1785_v3  ;;  %1616 = vmatprep.subr.bf16.mxu1 %v2021_v0  ;;  %v1800_v20 = vld [vmem:[#allocation4 + $0x8] sm:$0xff]   ;;  %v1802_v22 = vld [vmem:[#allocation4 + $0x10] sm:$0xff]   ;;  %v337_v23 = vpack.c.bf16 %v82_v19, %v81_v18  ;;  %v1804_v25 = vld [vmem:[#allocation4 + $0x18] sm:$0xff]  }
  0x52   :  { %1584 = vmatprep.subr.bf16.mxu0 %v1787_v5  ;;  %v1803_v24 = vld [vmem:[#allocation9 + $0x8] sm:$0xff]   ;;  %v1805_v26 = vld [vmem:[#allocation9 + $0x10] sm:$0xff]   ;;  %v1806_v27 = vld [vmem:[#allocation4 + $0x20] sm:$0xff]  }
  0x53   :  { %v1807_v28 = vld [vmem:[#allocation9 + $0x18] sm:$0xff]   ;;  %v1808_v29 = vld [vmem:[#allocation4 + $0x28] sm:$0xff]   ;;  %v1809_v30 = vld [vmem:[#allocation9 + $0x20] sm:$0xff]  }
  0x54   :  { %1617 = vmatpush3.bf16.msra.mxu1 %v1788_v6  ;;  %v1810_v31 = vld [vmem:[#allocation4 + $0x30] sm:$0xff]   ;;  %v1811_v32 = vld [vmem:[#allocation9 + $0x28] sm:$0xff]   ;;  %v1812_v33 = vld [vmem:[#allocation4 + $0x38] sm:$0xff]  }
  0x55   :  { %1585 = vmatpush3.bf16.msra.mxu0 %v1787_v5  ;;  %1618 = vmatprep.subr.bf16.mxu1 %v2021_v0  ;;  %v1813_v34 = vld [vmem:[#allocation9 + $0x30] sm:$0xff]   ;;  %v1814_v35 = vld [vmem:[#allocation9 + $0x38] sm:$0xff]   ;;  %v1815_v36 = vld [vmem:[#allocation9] sm:$0xff]  }
  0x56   :  { %1586 = vmatprep.subr.bf16.mxu0 %v1789_v7  ;;  %v1816_v37 = vld [vmem:[#allocation9 + $0x8] sm:$0xff]   ;;  %v1817_v38 = vld [vmem:[#allocation9 + $0x10] sm:$0xff]   ;;  %v1818_v39 = vld [vmem:[#allocation9 + $0x18] sm:$0xff]  }
  0x57   :  { %v2156_v40 = vld [vmem:[%s2279_s2] ss:$0 sm:$0xff]  ;;  %v1820_v6 = vld [vmem:[#allocation9 + $0x28] sm:$0xff]   ;;  %v1826_v12 = vld [vmem:[#allocation9 + $0x18] sm:$0xff]   ;;  %s2023_s2 = smov [#allocation12]  }
  0x58   :  { %1619 = vmatpush3.bf16.msra.mxu1 %v1790_v8  ;;  %v1819_v5 = vld [vmem:[#allocation9 + $0x20] sm:$0xff]   ;;  %v1822_v8 = vld [vmem:[#allocation9 + $0x38] sm:$0xff]   ;;  %s1325_s19 = sshll.u32 %s2023_s2, 4  ;;  %s1326_s19 = int_to_ptr.vmem [resolvable:$true] %s1325_s19 }
  0x59   :  { %1587 = vmatpush3.bf16.msra.mxu0 %v1789_v7  ;;  %1620 = vmatprep.subr.bf16.mxu1 %v2021_v0  ;;  %v1821_v7 = vld [vmem:[#allocation9 + $0x30] sm:$0xff]   ;;  %s1983_s20 = scalar_lea.vmem %s1326_s19, 1024  ;;  %p1988_p5 = scmp.lt.s32.totalorder %s1326_s19, %s1326_s19 }
  0x5a   :  { %1588 = vmatprep.subr.bf16.mxu0 %v1791_v9  ;;  %p1984_p4 = scmp.ne.s32.totalorder %s1326_s19, %s1983_s20  ;;  %p1989_p6 = scmp.lt.s32.totalorder %s1983_s20, %s1983_s20 }
  0x5c   :  { %1621 = vmatpush3.bf16.msra.mxu1 %v1792_v10  ;;  %v1824_v10 = vld [vmem:[#allocation9 + $0x8] sm:$0xff]   ;;  %p1990_p7 = por %p1989_p6, %p1988_p5 }
  0x5d   :  { %1589 = vmatpush3.bf16.msra.mxu0 %v1791_v9  ;;  %1622 = vmatprep.subr.bf16.mxu1 %v2021_v0  ;;  %v1823_v9 = vld [vmem:[#allocation9] sm:$0xff]  }
  0x5e   :  { %1590 = vmatprep.subr.bf16.mxu0 %v1793_v11  ;;  %p1991_p8 = pnand %p1990_p7, %p1984_p4 }
  0x60   :  { %1623 = vmatpush3.bf16.msra.mxu1 %v1794_v13 }
  0x61   :  { %1591 = vmatpush3.bf16.msra.mxu0 %v1793_v11  ;;  %1624 = vmatprep.subr.bf16.mxu1 %v2021_v0  ;;  %v1825_v11 = vld [vmem:[#allocation9 + $0x10] sm:$0xff]  }
  0x62   :  { %1592 = vmatprep.subr.bf16.mxu0 %v1795_v14 }
  0x64   :  { %1625 = vmatpush3.bf16.msra.mxu1 %v1796_v15 }
  0x65   :  { %1593 = vmatpush3.bf16.msra.mxu0 %v1795_v14  ;;  %1626 = vmatprep.subr.bf16.mxu1 %v2021_v0 }
  0x66   :  { %1594 = vmatprep.subr.bf16.mxu0 %v1797_v16 }
  0x68   :  { %1627 = vmatpush3.bf16.msra.mxu1 %v1798_v17 }
  0x69   :  { %1595 = vmatpush3.bf16.msra.mxu0 %v1797_v16  ;;  %1652 = vmatprep.subr.bf16.mxu1 %v2021_v0 }
  0x6a   :  { %1632 = vmatprep.subr.bf16.mxu0 %v2021_v0 }
  0x6b   :  { %1629 = vmatmul.mubr.bf16.vlgmr.msra.gmra.mrb[0].mxu1 %v337_v23 }
  0x6c   :  { %1597 = vmatmul.mubr.bf16.vlgmr.msra.gmra.mrb[0].mxu0 %v1800_v20  ;;  %1668 = vmatprep.mubr.msk.bf16.mxu1 %vm2022_vm0, %v2021_v0 }
  0x6d   :  { %1633 = vmatpush3.bf16.msra.mxu0 %v1801_v21  ;;  %1600 = vmatprep.mubr.bf16.mxu0 %v1802_v22 }
  0x6e   :  { %1634 = vmatprep.subr.bf16.mxu0 %v2021_v0  ;;  %1653 = vmatpush3.bf16.msra.mxu1 %v1815_v36 }
  0x6f   :  { %1654 = vmatprep.subr.bf16.mxu1 %v2021_v0 }
  0x71   :  { %1635 = vmatpush3.bf16.msra.mxu0 %v1803_v24  ;;  %v1827_v24 = vld [vmem:[#allocation9 + $0x20] sm:$0xff]  }
  0x72   :  { %1636 = vmatprep.subr.bf16.mxu0 %v2021_v0  ;;  %1655 = vmatpush3.bf16.msra.mxu1 %v1816_v37 }
  0x73   :  { %1656 = vmatprep.subr.bf16.mxu1 %v2021_v0 }
  0x74   :  { %1601 = vmatmul.mubr.bf16.gmra.mrb[4].mxu0 %v1804_v25  ;;  %v1828_v25 = vld [vmem:[#allocation9 + $0x28] sm:$0xff]  }
  0x75   :  { %1637 = vmatpush3.bf16.msra.mxu0 %v1805_v26  ;;  %1604 = vmatprep.mubr.bf16.mxu0 %v1806_v27  ;;  %v1829_v26 = vld [vmem:[#allocation9 + $0x30] sm:$0xff]   ;;  %v1830_v27 = vld [vmem:[#allocation9 + $0x38] sm:$0xff]  }
  0x76   :  { %1638 = vmatprep.subr.bf16.mxu0 %v2021_v0  ;;  %1657 = vmatpush3.bf16.msra.mxu1 %v1817_v38 }
  0x77   :  { %1658 = vmatprep.subr.bf16.mxu1 %v2021_v0 }
  0x79   :  { %1639 = vmatpush3.bf16.msra.mxu0 %v1807_v28  ;;  %v1831_v28 = vld [vmem:[#allocation9] sm:$0xff]  }
  0x7a   :  { %1640 = vmatprep.subr.bf16.mxu0 %v2021_v0  ;;  %1659 = vmatpush3.bf16.msra.mxu1 %v1818_v39 }
  0x7b   :  { %1660 = vmatprep.subr.bf16.mxu1 %v2021_v0 }
  0x7c   :  { %1605 = vmatmul.mubr.bf16.gmra.mrb[8].mxu0 %v1808_v29  ;;  %v1832_v29 = vld [vmem:[#allocation9 + $0x8] sm:$0xff]  }
  0x7d   :  { %1641 = vmatpush3.bf16.msra.mxu0 %v1809_v30  ;;  %1608 = vmatprep.mubr.bf16.mxu0 %v1810_v31  ;;  %v1833_v30 = vld [vmem:[#allocation9 + $0x10] sm:$0xff]   ;;  %v1834_v31 = vld [vmem:[#allocation9 + $0x18] sm:$0xff]  }
  0x7e   :  { %1642 = vmatprep.subr.bf16.mxu0 %v2021_v0  ;;  %1661 = vmatpush3.bf16.msra.mxu1 %v1819_v5 }
  0x7f   :  { %1662 = vmatprep.subr.bf16.mxu1 %v2021_v0 }
  0x81   :  { %1643 = vmatpush3.bf16.msra.mxu0 %v1811_v32 }
  0x82   :  { %1644 = vmatprep.subr.bf16.mxu0 %v2021_v0  ;;  %1663 = vmatpush3.bf16.msra.mxu1 %v1820_v6 }
  0x83   :  { %1664 = vmatprep.subr.bf16.mxu1 %v2021_v0 }
  0x84   :  { %1609 = vmatmul.mubr.bf16.gmra.mrb[12].mxu0 %v1812_v33 }
  0x85   :  { %1648 = vmatprep.mubr.msk.bf16.mxu0 %vm2022_vm0, %v2021_v0  ;;  %1645 = vmatpush3.bf16.msra.mxu0 %v1813_v34 }
  0x86   :  { %1646 = vmatprep.subr.bf16.mxu0 %v2021_v0  ;;  %1665 = vmatpush3.bf16.msra.mxu1 %v1821_v7 }
  0x87   :  { %1666 = vmatprep.subr.bf16.mxu1 %v2021_v0 }
  0x89   :  { %1647 = vmatpush3.bf16.msra.mxu0 %v1814_v35 }
  0x8a   :  { %1672 = vmatprep.subr.bf16.mxu0 %v2021_v0  ;;  %1667 = vmatpush3.bf16.msra.mxu1 %v1822_v8 }
  0x8b   :  { %1692 = vmatprep.subr.bf16.mxu1 %v2021_v0 }
 0x13e   :  { %v436_v42 = vpop.f32.mrb[0].mxu1 }
 0x13f   :  { %v1598_v41 = vpop.f32.mrb[0].mxu0  ;;  %v1630_v44 = vpop.f32.mrb[1].mxu1 }
 0x140   :  { %v254_v43 = vpop.f32.mrb[1].mxu0  ;;  %v439_v47 = vpop.f32.mrb[2].mxu1  ;;  %v263_v13 = vadd.f32 %v1598_v41, %v2156_v40  ;;  %v1835_v44 = vld [vmem:[#allocation9 + $0x20] sm:$0xff]  }
 0x141   :  { %v255_v45 = vadd.f32 %v2156_v40, %v254_v43  ;;  %v1599_v46 = vpop.f32.mrb[2].mxu0  ;;  %v1631_v49 = vpop.f32.mrb[3].mxu1 }
 0x142   :  { %v257_v48 = vpop.f32.mrb[3].mxu0  ;;  %v266_v15 = vadd.f32 %v1599_v46, %v2156_v40  ;;  %v1837_v46 = vld [vmem:[#allocation9 + $0x30] sm:$0xff]   ;;  %v1840_v49 = vld [vmem:[#allocation9 + $0x8] sm:$0xff]  }
 0x143   :  { %v443_v50 = vadd.f32 %v436_v42, %v255_v45  ;;  %v258_v51 = vadd.f32 %v2156_v40, %v257_v48  ;;  %v1836_v45 = vld [vmem:[#allocation9 + $0x28] sm:$0xff]   ;;  %v1839_v48 = vld [vmem:[#allocation9] sm:$0xff]  }
 0x145   :  { %v444_v52 = vadd.f32 %v439_v47, %v258_v51  ;;  %1863 = vtanh.f32 %v443_v50  ;;  %v1838_v47 = vld [vmem:[#allocation9 + $0x38] sm:$0xff]   ;;  %v1841_v50 = vld [vmem:[#allocation9 + $0x10] sm:$0xff]  }
 0x146   :  { %v1842_v51 = vld [vmem:[#allocation9 + $0x18] sm:$0xff]  }
 0x147   :  { %1865 = vtanh.f32 %v444_v52  ;;  %v2160_v53 = vpop.f32.mrb[4].mxu0 }
 0x148   :  { %v2162_v54 = vpop.f32.mrb[5].mxu0  ;;  %v279_v52 = vadd.f32 %v2160_v53, %v2156_v40  ;;  %v1843_v53 = vld [vmem:[#allocation9 + $0x20] sm:$0xff]  }
 0x149   :  { %v2164_v55 = vpop.f32.mrb[6].mxu0  ;;  %v271_v32 = vadd.f32 %v2156_v40, %v2162_v54 }
 0x14a   :  { %v2166_v56 = vpop.f32.mrb[7].mxu0 }
 0x14b   :  { %v274_v34 = vadd.f32 %v2156_v40, %v2166_v56  ;;  %v282_v56 = vadd.f32 %v2164_v55, %v2156_v40  ;;  %v1844_v55 = vld [vmem:[#allocation9 + $0x28] sm:$0xff]  }
 0x14f   :  { %v1864_v57 = vpop.eup %1863  ;;  %v2170_v60 = vpop.f32.mrb[8].mxu0 }
 0x150   :  { %v2172_v61 = vpop.f32.mrb[9].mxu0 }
 0x151   :  { %v1866_v58 = vpop.eup %1865  ;;  %v2174_v62 = vpop.f32.mrb[10].mxu0 }
 0x152   :  { %v447_v59 = vpack.c.bf16 %v1866_v58, %v1864_v57  ;;  %v2176_v63 = vpop.f32.mrb[11].mxu0 }
 0x154   :  { %1456 = vst [vmem:[#allocation12] sm:$0xff] %v447_v59   ;;  %1649 = vmatmul.mubr.bf16.vlgmr.msra.gmra.mrb[16].mxu0 %v447_v59 }
 0x155   :  { %1688 = vmatprep.mubr.msk.bf16.mxu0 %vm2022_vm0, %v2021_v0  ;;  %1673 = vmatpush3.bf16.msra.mxu0 %v1823_v9 }
 0x156   :  { %1674 = vmatprep.subr.bf16.mxu0 %v2021_v0 }
 0x157   :  { %v2178_v1 = vpop.f32.mrb[12].mxu0 }
 0x158   :  { %v2180_v2 = vpop.f32.mrb[13].mxu0 }
 0x159   :  { %v2182_v3 = vpop.f32.mrb[14].mxu0  ;;  %1675 = vmatpush3.bf16.msra.mxu0 %v1824_v10  ;;  %v1845_v10 = vld [vmem:[#allocation9 + $0x30] sm:$0xff]  }
 0x15a   :  { %v2184_v4 = vpop.f32.mrb[15].mxu0  ;;  %1676 = vmatprep.subr.bf16.mxu0 %v2021_v0 }
 0x15d   :  { %1677 = vmatpush3.bf16.msra.mxu0 %v1825_v11  ;;  %v1846_v11 = vld [vmem:[#allocation9 + $0x38] sm:$0xff]  }
 0x15e   :  { %1678 = vmatprep.subr.bf16.mxu0 %v2021_v0 }
 0x161   :  { %1679 = vmatpush3.bf16.msra.mxu0 %v1826_v12  ;;  %v1847_v12 = vld [vmem:[#allocation9] sm:$0xff]  }
 0x162   :  { %1680 = vmatprep.subr.bf16.mxu0 %v2021_v0 }
 0x165   :  { %1681 = vmatpush3.bf16.msra.mxu0 %v1827_v24 }
 0x166   :  { %1682 = vmatprep.subr.bf16.mxu0 %v2021_v0 }
 0x169   :  { %1683 = vmatpush3.bf16.msra.mxu0 %v1828_v25 }
 0x16a   :  { %1684 = vmatprep.subr.bf16.mxu0 %v2021_v0 }
 0x16d   :  { %1685 = vmatpush3.bf16.msra.mxu0 %v1829_v26 }
 0x16e   :  { %1686 = vmatprep.subr.bf16.mxu0 %v2021_v0 }
 0x171   :  { %1687 = vmatpush3.bf16.msra.mxu0 %v1830_v27  ;;  %v1853_v27 = vld [vmem:[#allocation9 + $0x30] sm:$0xff]  }
 0x172   :  { %1712 = vmatprep.subr.bf16.mxu0 %v2021_v0 }
 0x227   :  { %v558_v14 = vpop.f32.mrb[16].mxu0 }
 0x228   :  { %v565_v16 = vadd.f32 %v558_v14, %v263_v13  ;;  %v1650_v17 = vpop.f32.mrb[17].mxu0  ;;  %v1848_v13 = vld [vmem:[#allocation9 + $0x8] sm:$0xff]   ;;  %v1849_v14 = vld [vmem:[#allocation9 + $0x10] sm:$0xff]  }
 0x229   :  { %v561_v18 = vpop.f32.mrb[18].mxu0 }
 0x22a   :  { %v566_v19 = vadd.f32 %v561_v18, %v266_v15  ;;  %v1651_v20 = vpop.f32.mrb[19].mxu0  ;;  %1867 = vtanh.f32 %v565_v16  ;;  %v1850_v15 = vld [vmem:[#allocation9 + $0x18] sm:$0xff]   ;;  %v287_v16 = vadd.f32 %v2156_v40, %v2172_v61  ;;  %v290_v18 = vadd.f32 %v2156_v40, %v2176_v63  ;;  %v1851_v61 = vld [vmem:[#allocation9 + $0x20] sm:$0xff]   ;;  %v1852_v63 = vld [vmem:[#allocation9 + $0x28] sm:$0xff]  }
 0x22c   :  { %1869 = vtanh.f32 %v566_v19 }
 0x234   :  { %v1868_v21 = vpop.eup %1867 }
 0x236   :  { %v1870_v22 = vpop.eup %1869 }
 0x237   :  { %v569_v23 = vpack.c.bf16 %v1870_v22, %v1868_v21 }
 0x239   :  { %1461 = vst [vmem:[#allocation12 + $0x8] sm:$0xff] %v569_v23   ;;  %1669 = vmatmul.mubr.bf16.vlgmr.msra.gmra.mrb[4].mxu1 %v569_v23 }
 0x23a   :  { %1708 = vmatprep.mubr.msk.bf16.mxu1 %vm2022_vm0, %v2021_v0  ;;  %1693 = vmatpush3.bf16.msra.mxu1 %v1831_v28  ;;  %v1854_v28 = vld [vmem:[#allocation9 + $0x38] sm:$0xff]  }
 0x23b   :  { %1694 = vmatprep.subr.bf16.mxu1 %v2021_v0 }
 0x23e   :  { %1695 = vmatpush3.bf16.msra.mxu1 %v1832_v29  ;;  %v1855_v29 = vld [vmem:[#allocation9] sm:$0xff]  }
 0x23f   :  { %1696 = vmatprep.subr.bf16.mxu1 %v2021_v0 }
 0x242   :  { %1697 = vmatpush3.bf16.msra.mxu1 %v1833_v30  ;;  %v1856_v30 = vld [vmem:[#allocation9 + $0x8] sm:$0xff]  }
 0x243   :  { %1698 = vmatprep.subr.bf16.mxu1 %v2021_v0 }
 0x246   :  { %1699 = vmatpush3.bf16.msra.mxu1 %v1834_v31  ;;  %v1857_v31 = vld [vmem:[#allocation9 + $0x10] sm:$0xff]  }
 0x247   :  { %1700 = vmatprep.subr.bf16.mxu1 %v2021_v0 }
 0x24a   :  { %1701 = vmatpush3.bf16.msra.mxu1 %v1835_v44 }
 0x24b   :  { %1702 = vmatprep.subr.bf16.mxu1 %v2021_v0 }
 0x24e   :  { %1703 = vmatpush3.bf16.msra.mxu1 %v1836_v45  ;;  %v1859_v45 = vld [vmem:[#allocation9 + $0x20] sm:$0xff]  }
 0x24f   :  { %1704 = vmatprep.subr.bf16.mxu1 %v2021_v0 }
 0x252   :  { %1705 = vmatpush3.bf16.msra.mxu1 %v1837_v46  ;;  %v1861_v46 = vld [vmem:[#allocation9 + $0x30] sm:$0xff]  }
 0x253   :  { %1706 = vmatprep.subr.bf16.mxu1 %v2021_v0 }
 0x256   :  { %1707 = vmatpush3.bf16.msra.mxu1 %v1838_v47  ;;  %v303_v47 = vadd.f32 %v2156_v40, %v2180_v2 }
 0x257   :  { %1732 = vmatprep.subr.bf16.mxu1 %v2021_v0 }
 0x30c   :  { %v681_v33 = vpop.f32.mrb[4].mxu1 }
 0x30d   :  { %v688_v35 = vadd.f32 %v681_v33, %v271_v32  ;;  %v1670_v36 = vpop.f32.mrb[5].mxu1  ;;  %v1858_v32 = vld [vmem:[#allocation9 + $0x18] sm:$0xff]   ;;  %v295_v33 = vadd.f32 %v2170_v60, %v2156_v40  ;;  %v1860_v60 = vld [vmem:[#allocation9 + $0x28] sm:$0xff]  }
 0x30e   :  { %v684_v37 = vpop.f32.mrb[6].mxu1 }
 0x30f   :  { %v689_v38 = vadd.f32 %v684_v37, %v274_v34  ;;  %v1671_v39 = vpop.f32.mrb[7].mxu1  ;;  %1871 = vtanh.f32 %v688_v35  ;;  %v298_v35 = vadd.f32 %v2174_v62, %v2156_v40  ;;  %v1862_v62 = vld [vmem:[#allocation9 + $0x38] sm:$0xff]  }
 0x311   :  { %1873 = vtanh.f32 %v689_v38 }
 0x319   :  { %v1872_v41 = vpop.eup %1871 }
 0x31b   :  { %v1874_v42 = vpop.eup %1873 }
 0x31c   :  { %v692_v43 = vpack.c.bf16 %v1874_v42, %v1872_v41 }
 0x31e   :  { %1466 = vst [vmem:[#allocation12 + $0x10] sm:$0xff] %v692_v43   ;;  %1689 = vmatmul.mubr.bf16.vlgmr.msra.gmra.mrb[20].mxu0 %v692_v43 }
 0x31f   :  { %1728 = vmatprep.mubr.msk.bf16.mxu0 %vm2022_vm0, %v2021_v0  ;;  %1713 = vmatpush3.bf16.msra.mxu0 %v1839_v48 }
 0x320   :  { %1714 = vmatprep.subr.bf16.mxu0 %v2021_v0 }
 0x323   :  { %1715 = vmatpush3.bf16.msra.mxu0 %v1840_v49  ;;  %v306_v49 = vadd.f32 %v2156_v40, %v2184_v4 }
 0x324   :  { %1716 = vmatprep.subr.bf16.mxu0 %v2021_v0 }
 0x327   :  { %1717 = vmatpush3.bf16.msra.mxu0 %v1841_v50 }
 0x328   :  { %1718 = vmatprep.subr.bf16.mxu0 %v2021_v0 }
 0x32b   :  { %1719 = vmatpush3.bf16.msra.mxu0 %v1842_v51 }
 0x32c   :  { %1720 = vmatprep.subr.bf16.mxu0 %v2021_v0 }
 0x32f   :  { %1721 = vmatpush3.bf16.msra.mxu0 %v1843_v53 }
 0x330   :  { %1722 = vmatprep.subr.bf16.mxu0 %v2021_v0 }
 0x333   :  { %1723 = vmatpush3.bf16.msra.mxu0 %v1844_v55 }
 0x334   :  { %1724 = vmatprep.subr.bf16.mxu0 %v2021_v0 }
 0x337   :  { %1725 = vmatpush3.bf16.msra.mxu0 %v1845_v10 }
 0x338   :  { %1726 = vmatprep.subr.bf16.mxu0 %v2021_v0 }
 0x33b   :  { %1727 = vmatpush3.bf16.msra.mxu0 %v1846_v11 }
 0x33c   :  { %1752 = vmatprep.subr.bf16.mxu0 %v2021_v0 }
 0x3f1   :  { %v804_v54 = vpop.f32.mrb[20].mxu0 }
 0x3f2   :  { %v811_v57 = vadd.f32 %v804_v54, %v279_v52  ;;  %v1690_v58 = vpop.f32.mrb[21].mxu0 }
 0x3f3   :  { %v807_v59 = vpop.f32.mrb[22].mxu0 }
 0x3f4   :  { %v812_v5 = vadd.f32 %v807_v59, %v282_v56  ;;  %v1691_v6 = vpop.f32.mrb[23].mxu0  ;;  %1875 = vtanh.f32 %v811_v57 }
 0x3f6   :  { %1877 = vtanh.f32 %v812_v5  ;;  %v314_v5 = vadd.f32 %v2182_v3, %v2156_v40 }
 0x3fe   :  { %v1876_v7 = vpop.eup %1875 }
 0x400   :  { %v1878_v8 = vpop.eup %1877 }
 0x401   :  { %v815_v9 = vpack.c.bf16 %v1878_v8, %v1876_v7 }
 0x403   :  { %1471 = vst [vmem:[#allocation12 + $0x18] sm:$0xff] %v815_v9   ;;  %1709 = vmatmul.mubr.bf16.vlgmr.msra.gmra.mrb[8].mxu1 %v815_v9 }
 0x404   :  { %1748 = vmatprep.mubr.msk.bf16.mxu1 %vm2022_vm0, %v2021_v0  ;;  %1733 = vmatpush3.bf16.msra.mxu1 %v1847_v12 }
 0x405   :  { %1734 = vmatprep.subr.bf16.mxu1 %v2021_v0 }
 0x408   :  { %1735 = vmatpush3.bf16.msra.mxu1 %v1848_v13 }
 0x409   :  { %1736 = vmatprep.subr.bf16.mxu1 %v2021_v0 }
 0x40c   :  { %1737 = vmatpush3.bf16.msra.mxu1 %v1849_v14 }
 0x40d   :  { %1738 = vmatprep.subr.bf16.mxu1 %v2021_v0 }
 0x410   :  { %1739 = vmatpush3.bf16.msra.mxu1 %v1850_v15 }
 0x411   :  { %1740 = vmatprep.subr.bf16.mxu1 %v2021_v0 }
 0x414   :  { %1741 = vmatpush3.bf16.msra.mxu1 %v1851_v61 }
 0x415   :  { %1742 = vmatprep.subr.bf16.mxu1 %v2021_v0 }
 0x418   :  { %1743 = vmatpush3.bf16.msra.mxu1 %v1852_v63 }
 0x419   :  { %1744 = vmatprep.subr.bf16.mxu1 %v2021_v0 }
 0x41c   :  { %1745 = vmatpush3.bf16.msra.mxu1 %v1853_v27 }
 0x41d   :  { %1746 = vmatprep.subr.bf16.mxu1 %v2021_v0 }
 0x420   :  { %1747 = vmatpush3.bf16.msra.mxu1 %v1854_v28 }
 0x4d6   :  { %v927_v17 = vpop.f32.mrb[8].mxu1 }
 0x4d7   :  { %v934_v19 = vadd.f32 %v927_v17, %v287_v16  ;;  %v1710_v20 = vpop.f32.mrb[9].mxu1 }
 0x4d8   :  { %v930_v21 = vpop.f32.mrb[10].mxu1 }
 0x4d9   :  { %v935_v22 = vadd.f32 %v930_v21, %v290_v18  ;;  %v1711_v23 = vpop.f32.mrb[11].mxu1  ;;  %1879 = vtanh.f32 %v934_v19 }
 0x4db   :  { %1881 = vtanh.f32 %v935_v22 }
 0x4e3   :  { %v1880_v24 = vpop.eup %1879 }
 0x4e5   :  { %v1882_v25 = vpop.eup %1881 }
 0x4e6   :  { %v938_v26 = vpack.c.bf16 %v1882_v25, %v1880_v24 }
 0x4e8   :  { %1476 = vst [vmem:[#allocation12 + $0x20] sm:$0xff] %v938_v26   ;;  %1729 = vmatmul.mubr.bf16.vlgmr.msra.gmra.mrb[24].mxu0 %v938_v26 }
 0x4e9   :  { %1768 = vmatprep.mubr.msk.bf16.mxu0 %vm2022_vm0, %v2021_v0  ;;  %1753 = vmatpush3.bf16.msra.mxu0 %v1855_v29 }
 0x4ea   :  { %1754 = vmatprep.subr.bf16.mxu0 %v2021_v0 }
 0x4ed   :  { %1755 = vmatpush3.bf16.msra.mxu0 %v1856_v30 }
 0x4ee   :  { %1756 = vmatprep.subr.bf16.mxu0 %v2021_v0 }
 0x4f1   :  { %1757 = vmatpush3.bf16.msra.mxu0 %v1857_v31 }
 0x4f2   :  { %1758 = vmatprep.subr.bf16.mxu0 %v2021_v0 }
 0x4f5   :  { %1759 = vmatpush3.bf16.msra.mxu0 %v1858_v32 }
 0x4f6   :  { %1760 = vmatprep.subr.bf16.mxu0 %v2021_v0 }
 0x4f9   :  { %1761 = vmatpush3.bf16.msra.mxu0 %v1859_v45 }
 0x4fa   :  { %1762 = vmatprep.subr.bf16.mxu0 %v2021_v0 }
 0x4fd   :  { %1763 = vmatpush3.bf16.msra.mxu0 %v1860_v60 }
 0x4fe   :  { %1764 = vmatprep.subr.bf16.mxu0 %v2021_v0 }
 0x501   :  { %1765 = vmatpush3.bf16.msra.mxu0 %v1861_v46 }
 0x502   :  { %1766 = vmatprep.subr.bf16.mxu0 %v2021_v0  ;;  %v311_v0 = vadd.f32 %v2178_v1, %v2156_v40 }
 0x505   :  { %1767 = vmatpush3.bf16.msra.mxu0 %v1862_v62 }
 0x5bb   :  { %v1050_v34 = vpop.f32.mrb[24].mxu0 }
 0x5bc   :  { %v1057_v36 = vadd.f32 %v1050_v34, %v295_v33  ;;  %v1730_v37 = vpop.f32.mrb[25].mxu0 }
 0x5bd   :  { %v1053_v38 = vpop.f32.mrb[26].mxu0 }
 0x5be   :  { %v1058_v39 = vadd.f32 %v1053_v38, %v298_v35  ;;  %v1731_v41 = vpop.f32.mrb[27].mxu0  ;;  %1883 = vtanh.f32 %v1057_v36 }
 0x5c0   :  { %1885 = vtanh.f32 %v1058_v39 }
 0x5c8   :  { %v1884_v42 = vpop.eup %1883 }
 0x5ca   :  { %v1886_v43 = vpop.eup %1885 }
 0x5cb   :  { %v1061_v44 = vpack.c.bf16 %v1886_v43, %v1884_v42 }
 0x5cd   :  { %1481 = vst [vmem:[#allocation12 + $0x28] sm:$0xff] %v1061_v44   ;;  %1749 = vmatmul.mubr.bf16.vlgmr.msra.gmra.mrb[12].mxu1 %v1061_v44 }
 0x6a0   :  { %v1173_v48 = vpop.f32.mrb[12].mxu1 }
 0x6a1   :  { %v1180_v50 = vadd.f32 %v1173_v48, %v303_v47  ;;  %v1750_v51 = vpop.f32.mrb[13].mxu1 }
 0x6a2   :  { %v1176_v52 = vpop.f32.mrb[14].mxu1 }
 0x6a3   :  { %v1181_v54 = vadd.f32 %v1176_v52, %v306_v49  ;;  %v1751_v56 = vpop.f32.mrb[15].mxu1  ;;  %1887 = vtanh.f32 %v1180_v50 }
 0x6a5   :  { %1889 = vtanh.f32 %v1181_v54 }
 0x6ad   :  { %v1888_v57 = vpop.eup %1887 }
 0x6af   :  { %v1890_v58 = vpop.eup %1889 }
 0x6b0   :  { %v1184_v59 = vpack.c.bf16 %v1890_v58, %v1888_v57 }
 0x6b2   :  { %1486 = vst [vmem:[#allocation12 + $0x30] sm:$0xff] %v1184_v59   ;;  %1769 = vmatmul.mubr.bf16.vlgmr.msra.gmra.mrb[28].mxu0 %v1184_v59 }
 0x785   :  { %v1296_v2 = vpop.f32.mrb[28].mxu0 }
 0x786   :  { %v1303_v4 = vadd.f32 %v1296_v2, %v311_v0  ;;  %v1770_v6 = vpop.f32.mrb[29].mxu0 }
 0x787   :  { %v1299_v7 = vpop.f32.mrb[30].mxu0 }
 0x788   :  { %v1304_v8 = vadd.f32 %v1299_v7, %v314_v5  ;;  %v1771_v9 = vpop.f32.mrb[31].mxu0  ;;  %1891 = vtanh.f32 %v1303_v4 }
 0x78a   :  { %1893 = vtanh.f32 %v1304_v8 }
 0x792   :  { %v1892_v53 = vpop.eup %1891 }
 0x794   :  { %v1894_v55 = vpop.eup %1893 }
 0x795   :  { %v1490_v10 = vpack.c.bf16 %v1894_v55, %v1892_v53 }
 0x797   :  { %1491 = vst [vmem:[#allocation12 + $0x38] sm:$0xff] %v1490_v10  }
 0x798   :  { %1994 = shalt.err (!%p1991_p8)
}
 0x799   :  { %s1995_s24 = scalar_lea.hbm %s2282_s5, 1024 }
 0x79a   :  { %p1996_p9 = scmp.ne.s32.totalorder %s2282_s5, %s1995_s24  ;;  %p1999_p10 = scmp.lt.u32.totalorder %s1995_s24, %s2282_s5 }
 0x79c   :  { %p2001_p11 = pnand %p1999_p10, %p1996_p9 }
 0x79e   :  { %2004 = shalt.err (!%p2001_p11)
}
 0x79f   :  { %1331 = dma.vmem_to_hbm [thread:$0]  %s1326_s19, 1024, %s2282_s5, [#allocation6], %s2015_s30, %s2015_s30, %s2016_s6  }
 0x7a0   :  { %2011 = dma.done.wait [#allocation6], 1024  }
 0x7a1   :  { %2012 = vsyncadd [#allocation6], 4294966272 }
 0x7a2   :  { %1335 = vsyncpa [#allocation5], 1 }
 0x7a3   :  { %1336 = vsyncpa [#allocation8], 1 }
 0x7a4   :  { %1337 = vsyncpa [#allocation11], 1 }
 0x7a5   :  { %1338 = vsyncpa [#allocation6], 1 }

</bundles_post_ra>
